<compile_context>
chip_gen: v5e
topology: v5e:2x2
jax: 0.10.0
libtpu: 0.0.40
codegen_flags: <defaults>
</compile_context>

<pallas_src>
import jax
import jax.numpy as jnp
from jax.experimental import pallas as pl
from jax.experimental.pallas import tpu as pltpu

KH = KW = 3
CIN = 3
COUT = 64
K = KH * KW * CIN          # 27 real contraction rows
KPAD = 32                  # padded to a sublane-friendly contraction depth


def _round_up(a, b):
    return ((a + b - 1) // b) * b


def _vmem_capacity_bytes():
    try:
        return int(pltpu.get_tpu_info().vmem_capacity_bytes)
    except Exception:
        return 64 << 20  # conservative (v7x-sized) fallback


def _pick_tiling(m_valid, width):
    """Choose the lane tile MT and padded sizes from the VMEM budget."""
    vmem = _vmem_capacity_bytes()
    # Output double-buffer (2 * COUT * MT * 4B) is the dominant block; keep it
    # to ~1/4 of physical VMEM, and cap at 8K lanes (diminishing returns).
    budget = vmem // 4
    mt_cap = max(128, (budget // (2 * COUT * 4)) // 128 * 128)
    mt = int(min(mt_cap, 8192))
    mfull_min = _round_up(m_valid, 128)
    if mt >= mfull_min:
        mt = mfull_min
        mfull = mfull_min
    else:
        mfull = _round_up(m_valid, mt)
    halo = (KH - 1) * width + (KW - 1)          # farthest tap offset
    halo_pad = _round_up(halo, 128)             # keep window width 128-aligned
    ww = mt + halo_pad                          # in-kernel window width (lanes)
    lpad = mfull + halo_pad                     # padded flattened input length
    return mt, mfull, ww, lpad


def _make_conv_kernel(width, mt, ww):
    """Per-(image, M-tile) conv kernel: one stacked MXU matmul per tile."""
    tap_offsets = [kh * width + kw for kh in range(KH) for kw in range(KW)]

    def kernel(x_ref, w_ref, b_ref, o_ref):
        # x_ref: (1, CIN, LPAD)  bf16 flattened, zero-padded image (resident)
        # w_ref: (COUT, KPAD)    bf16 stacked weights (resident)
        # b_ref: (COUT, 1)       f32 bias (resident)
        # o_ref: (1, COUT, MT)   f32 lane-dense output tile
        j = pl.program_id(1)
        base = pl.multiple_of(j * mt, 128)
        # Aligned dynamic window load; per-tap shifts below are static.
        win = x_ref[0, :, pl.ds(base, ww)].astype(jnp.float32)     # (CIN, WW)
        taps = [win[:, o:o + mt] for o in tap_offsets]             # 9 x (CIN, MT)
        taps.append(jnp.zeros((KPAD - K, mt), jnp.float32))        # pad 27 -> 32
        xs = jnp.concatenate(taps, axis=0).astype(jnp.bfloat16)    # (KPAD, MT)
        acc = jnp.dot(w_ref[...], xs,
                      preferred_element_type=jnp.float32)          # (COUT, MT)
        o_ref[0, :, :] = acc + b_ref[...]                          # bias broadcast

    return kernel


def heino_forward(x_nchw, w_oihw, bias):
    """Conv2d(3->64, k=3, stride=1, valid padding); NCHW in / NCHW out."""
    N, Cin, H, W = x_nchw.shape
    assert Cin == CIN and H >= KH and W >= KW
    Ho, Wo = H - KH + 1, W - KW + 1

    # "Same-width" trick over the flattened spatial axis: compute Ho*W output
    # columns per image; the KW-1 wrap-around columns per row are garbage and
    # are cropped below.
    m_valid = Ho * W
    mt, mfull, ww, lpad = _pick_tiling(m_valid, W)
    n_mtiles = mfull // mt

    # bf16 data path (f32 accumulation in the kernel).
    x_flat = x_nchw.reshape(N, CIN, H * W).astype(jnp.bfloat16)
    x_flat = jnp.pad(x_flat, ((0, 0), (0, 0), (0, lpad - H * W)))

    # PyTorch weight (Cout, Cin, KH, KW) -> (Cout, [kh, kw, cin]) matching the
    # kernel's tap-major stacking order; pad contraction dim 27 -> 32.
    w_mat = jnp.transpose(w_oihw, (0, 2, 3, 1)).reshape(COUT, K)
    w_mat = jnp.pad(w_mat, ((0, 0), (0, KPAD - K))).astype(jnp.bfloat16)
    b_col = bias.reshape(COUT, 1).astype(jnp.float32)

    flops = 2 * N * COUT * K * Ho * Wo
    bytes_accessed = (x_flat.size * 2 + w_mat.size * 2 + b_col.size * 4
                      + N * COUT * mfull * 4)

    # VMEM budget: resident input + double-buffered output tile + weights.
    vmem_est = (2 * 8 * lpad * 2            # input block (8-sublane padded), x2
                + 2 * COUT * mt * 4         # output tile double buffer
                + 2 * (COUT * KPAD * 2 + COUT * 4)
                + (8 << 20))                # stacked operand / internal scratch headroom
    vmem_limit = int(min(max(vmem_est, 32 << 20), 48 << 20))

    out = pl.pallas_call(
        _make_conv_kernel(W, mt, ww),
        out_shape=jax.ShapeDtypeStruct((N, COUT, mfull), jnp.float32),
        grid=(N, n_mtiles),
        in_specs=[
            pl.BlockSpec((1, CIN, lpad), lambda n, j: (n, 0, 0)),   # per-image, resident over j
            pl.BlockSpec((COUT, KPAD), lambda n, j: (0, 0)),        # resident weights
            pl.BlockSpec((COUT, 1), lambda n, j: (0, 0)),           # resident bias
        ],
        out_specs=pl.BlockSpec((1, COUT, mt), lambda n, j: (n, 0, j)),
        compiler_params=pltpu.CompilerParams(
            dimension_semantics=("parallel", "parallel"),
            vmem_limit_bytes=vmem_limit),
        cost_estimate=pl.CostEstimate(flops=flops, transcendentals=0,
                                      bytes_accessed=bytes_accessed),
    )(x_flat, w_mat, b_col)

    # TODO(synk): fuse this crop into the downstream consumer (it re-copies the
    # 64-channel slab); kept here so the standalone module returns exact NCHW.
    out = out[:, :, :m_valid].reshape(N, COUT, Ho, W)[:, :, :, :Wo]
    return out


if __name__ == "__main__":
    key = jax.random.PRNGKey(0)
    k_x, k_w, k_b = jax.random.split(key, 3)

    # Small input consistent with Conv2d(in_channels=3, ...): N=2, C=3, H=W=16
    x = jax.random.normal(k_x, (2, CIN, 16, 16), dtype=jnp.float32)

    # Deterministic parameter init (PyTorch-style uniform +/- 1/sqrt(fan_in))
    fan_in = CIN * KH * KW
    bound = 1.0 / (fan_in ** 0.5)
    w = jax.random.uniform(k_w, (COUT, CIN, KH, KW), jnp.float32, -bound, bound)
    b = jax.random.uniform(k_b, (COUT,), jnp.float32, -bound, bound)

    fwd = jax.jit(heino_forward)
    y = jax.block_until_ready(fwd(x, w, b))
    assert y.shape == (2, COUT, 14, 14), y.shape

    # Reference: XLA conv on the same bf16-rounded inputs (the kernel uses a
    # bf16 data path with f32 accumulation), so only summation order differs.
    x_q = x.astype(jnp.bfloat16).astype(jnp.float32)
    w_q = w.astype(jnp.bfloat16).astype(jnp.float32)
    ref = jax.lax.conv_general_dilated(
        x_q, w_q, window_strides=(1, 1), padding="VALID",
        dimension_numbers=("NCHW", "OIHW", "NCHW"),
    ) + b.reshape(1, COUT, 1, 1)
    max_err = float(jnp.max(jnp.abs(y - ref)))
    assert jnp.allclose(y, ref, atol=2e-2, rtol=2e-2), max_err

    print("KERNEL_OK")
</pallas_src>

<mosaic_0001>
module attributes {stable_mosaic.version = 11 : i64} {
  func.func @kernel(%arg0: i32, %arg1: i32, %arg2: memref<1x3x384xbf16, #tpu.memory_space<vmem>>, %arg3: memref<64x32xbf16, #tpu.memory_space<vmem>>, %arg4: memref<64x1xf32, #tpu.memory_space<vmem>>, %arg5: memref<1x64x256xf32, #tpu.memory_space<vmem>>) attributes {dimension_semantics = [#tpu.dimension_semantics<parallel>, #tpu.dimension_semantics<parallel>], iteration_bounds = array<i64: 2, 1>, scalar_prefetch = 0 : i64, scratch_operands = 0 : i64, tpu.core_type = #tpu.core_type<tc>, window_params = [{transform_indices = @transform_0, window_bounds = array<i64: 1, 3, 384>}, {pipeline_mode = #tpu.pipeline_mode<synchronous>, transform_indices = @transform_1, window_bounds = array<i64: 64, 32>}, {pipeline_mode = #tpu.pipeline_mode<synchronous>, transform_indices = @transform_2, window_bounds = array<i64: 64, 1>}, {transform_indices = @transform_3, window_bounds = array<i64: 1, 64, 256>}]} {
    %c256_i32 = arith.constant 256 : i32
    %0 = arith.muli %arg1, %c256_i32 : i32
    %1 = tpu.assume_multiple %0, 128 : i32
    %c0 = arith.constant 0 : index
    %c0_0 = arith.constant 0 : index
    %2 = arith.index_cast %1 : i32 to index
    %3 = vector.load %arg2[%c0, %c0_0, %2] : memref<1x3x384xbf16, #tpu.memory_space<vmem>>, vector<1x3x384xbf16>
    %4 = vector.shape_cast %3 : vector<1x3x384xbf16> to vector<3x384xbf16>
    %5 = arith.extf %4 : vector<3x384xbf16> to vector<3x384xf32>
    %6 = vector.extract_strided_slice %5 {offsets = [0, 0], sizes = [3, 256], strides = [1, 1]} : vector<3x384xf32> to vector<3x256xf32>
    %7 = vector.extract_strided_slice %5 {offsets = [0, 1], sizes = [3, 256], strides = [1, 1]} : vector<3x384xf32> to vector<3x256xf32>
    %8 = vector.extract_strided_slice %5 {offsets = [0, 2], sizes = [3, 256], strides = [1, 1]} : vector<3x384xf32> to vector<3x256xf32>
    %9 = vector.extract_strided_slice %5 {offsets = [0, 16], sizes = [3, 256], strides = [1, 1]} : vector<3x384xf32> to vector<3x256xf32>
    %10 = vector.extract_strided_slice %5 {offsets = [0, 17], sizes = [3, 256], strides = [1, 1]} : vector<3x384xf32> to vector<3x256xf32>
    %11 = vector.extract_strided_slice %5 {offsets = [0, 18], sizes = [3, 256], strides = [1, 1]} : vector<3x384xf32> to vector<3x256xf32>
    %12 = vector.extract_strided_slice %5 {offsets = [0, 32], sizes = [3, 256], strides = [1, 1]} : vector<3x384xf32> to vector<3x256xf32>
    %13 = vector.extract_strided_slice %5 {offsets = [0, 33], sizes = [3, 256], strides = [1, 1]} : vector<3x384xf32> to vector<3x256xf32>
    %14 = vector.extract_strided_slice %5 {offsets = [0, 34], sizes = [3, 256], strides = [1, 1]} : vector<3x384xf32> to vector<3x256xf32>
    %cst = arith.constant 0.000000e+00 : f32
    %15 = vector.broadcast %cst : f32 to vector<5x256xf32>
    %16 = tpu.concatenate %6, %7, %8, %9, %10, %11, %12, %13, %14, %15 in 0 : vector<3x256xf32>, vector<3x256xf32>, vector<3x256xf32>, vector<3x256xf32>, vector<3x256xf32>, vector<3x256xf32>, vector<3x256xf32>, vector<3x256xf32>, vector<3x256xf32>, vector<5x256xf32> -> vector<32x256xf32>
    %17 = arith.truncf %16 : vector<32x256xf32> to vector<32x256xbf16>
    %c0_1 = arith.constant 0 : index
    %c0_2 = arith.constant 0 : index
    %18 = vector.load %arg3[%c0_1, %c0_2] : memref<64x32xbf16, #tpu.memory_space<vmem>>, vector<64x32xbf16>
    %cst_3 = arith.constant dense<0.000000e+00> : vector<64x256xf32>
    %19 = tpu.matmul %18, %17, %cst_3 {dimension_numbers = #tpu.dot_dimension_numbers<[1], [0], [0], [1], [0, 0, 1, 1], [], []>} : vector<64x32xbf16>, vector<32x256xbf16>, vector<64x256xf32> -> vector<64x256xf32>
    %c0_4 = arith.constant 0 : index
    %c0_5 = arith.constant 0 : index
    %20 = vector.load %arg4[%c0_4, %c0_5] : memref<64x1xf32, #tpu.memory_space<vmem>>, vector<64x1xf32>
    %21 = vector.broadcast %20 : vector<64x1xf32> to vector<64x256xf32>
    %22 = arith.addf %19, %21 : vector<64x256xf32>
    %c0_6 = arith.constant 0 : index
    %c0_7 = arith.constant 0 : index
    %c0_8 = arith.constant 0 : index
    %23 = vector.load %arg5[%c0_6, %c0_7, %c0_8] : memref<1x64x256xf32, #tpu.memory_space<vmem>>, vector<1x64x256xf32>
    %24 = vector.shape_cast %23 : vector<1x64x256xf32> to vector<64x256xf32>
    %25 = vector.shape_cast %22 : vector<64x256xf32> to vector<1x64x256xf32>
    tpu.vector_store %arg5[%c0_6, %c0_7, %c0_8], %25 {strides = array<i32>} : memref<1x64x256xf32, #tpu.memory_space<vmem>>, vector<1x64x256xf32>,
    return
  }
  func.func @transform_0(%arg0: i32, %arg1: i32) -> (i32, i32, i32) {
    %c0_i32 = arith.constant 0 : i32
    %c0_i32_0 = arith.constant 0 : i32
    %c0_i32_1 = arith.constant 0 : i32
    return %arg0, %c0_i32, %c0_i32_0 : i32, i32, i32
  }
  func.func @transform_1(%arg0: i32, %arg1: i32) -> (i32, i32) {
    %c0_i32 = arith.constant 0 : i32
    %c0_i32_0 = arith.constant 0 : i32
    %c0_i32_1 = arith.constant 0 : i32
    return %c0_i32, %c0_i32_0 : i32, i32
  }
  func.func @transform_2(%arg0: i32, %arg1: i32) -> (i32, i32) {
    %c0_i32 = arith.constant 0 : i32
    %c0_i32_0 = arith.constant 0 : i32
    %c0_i32_1 = arith.constant 0 : i32
    return %c0_i32, %c0_i32_0 : i32, i32
  }
  func.func @transform_3(%arg0: i32, %arg1: i32) -> (i32, i32, i32) {
    %c0_i32 = arith.constant 0 : i32
    %c0_i32_0 = arith.constant 0 : i32
    return %arg0, %c0_i32, %arg1 : i32, i32, i32
  }
}

</mosaic_0001>

<bundles_post_ra>
// kernel: heino_forward.1
= control target key start
LH: loop header
LB: loop body
LE: loop exit
PB: predicated region body
PF: predicated region fallthrough
CT: control target
= control target key end

     0   :  { %s819_s12 = smov 0   ;;  %s821_s13 = smov 0   ;;  %s1009_s0 = inlined_call_operand.vmem [shape: bf16[2,3,384], index: 0, kind: input, shape index: {}]   ;;  %s1010_s1 = inlined_call_operand.vmem [shape: bf16[64,32], index: 1, kind: input, shape index: {}]   ;;  %s1011_s2 = inlined_call_operand.vmem [shape: f32[64,1], index: 2, kind: input, shape index: {}]   ;;  %s1012_s3 = inlined_call_operand.vmem [shape: f32[2,64,256], index: 3, kind: output, shape index: {}]  }
   0x1   :  { %s823_s14 = smov 0  }
   0x2 LB: > { %s25_s15 = sadd.s32 1, %s783_s13  ;;  %p642_p0 = scmp.ge.s32.totalorder %s787_s14, 1  ;;  %s787_s14 = sphi %s823_s14, %s13_s14   ;;  %s783_s13 = sphi %s821_s13, %s1014_s13   ;;  %s779_s12 = sphi %s819_s12, %s1013_s12  }
   0x3   : > { %p27_p1 = scmp.ge.s32.totalorder %s25_s15, 2  ;;  %p151_p2 = scmp.lt.s32.totalorder %s787_s14, 3 }
   0x5   : > { %s1016_s15 = smov (%p27_p1, %s25_s15), 0  ;;  %p152_p3 = pnand %p642_p0, %p151_p2 }
   0x6   : > { %p179_p4 = scmp.lt.s32.totalorder (!%p152_p3), %s779_s12, 1  ;;  %s789_s20 = smov (!%p152_p3), 126  }
   0x7   : > { %155 = sbr.rel (%p152_p3) target bundleno = 385 (0x181), region = 32  ;;  %s790_s21 = smov (!%p152_p3), 127  }
   0x8   : > { %s791_s22 = smov (!%p152_p3), 112   ;;  %s792_s23 = smov (!%p152_p3), 110  }
   0x9   : > { %s793_s24 = smov (!%p152_p3), 96   ;;  %s794_s25 = smov (!%p152_p3), 95  }
   0xa   : > { %s795_s26 = smov (!%p152_p3), 94   ;;  %s796_s27 = smov (!%p152_p3), 111  }
   0xc   : > { %s1018_s12 = smov (!%p179_p4, %s779_s12), 1  ;;  %vm245_vm0 = vcmask 1031168   ;;  %vm265_vm1 = vcmask 916480   ;;  %vm225_vm2 = vcmask 1039360   ;;  %vm371_vm3 = vcmask 1040384  }
   0xd   : > { %s687_s16 = smul.u32 6, %s1018_s12  ;;  %vm303_vm4 = vcmask 900096   ;;  %vm365_vm5 = vcmask 1042432   ;;  %vm323_vm6 = vcmask 785408   ;;  %vm283_vm7 = vcmask 908288   ;;  %s678_s29 = sshll.u32 %s1018_s12, 7 }
   0xe   : > { %vm343_vm8 = vcmask 777216   ;;  %vm380_vm9 = vcmask 1041408   ;;  %vm360_vm10 = vcmask 769024   ;;  %vm383_vm11 = vcmask 1044480   ;;  %s982_s5 = scalar_lea.vmem %s1012_s3, %s678_s29 }
   0xf   : > { %s183_s19 = scalar_lea.vmem %s1009_s0, %s687_s16  ;;  %vm374_vm12 = vcmask 1043456   ;;  %vm377_vm13 = vcmask 1046528   ;;  %vm798_vm14 = vmmov 1  }
  0x10   : > { %v200_v0 = vld [vmem:[%s183_s19] sm:$0x3f]  ;;  %vm662_vm15 = vmpackc.low %vm365_vm5, %vm798_vm14 }
  0x11   : > { %v843_v1 = vunpack.c.h.bf16 %v200_v0  ;;  %v845_v2 = vunpack.c.l.bf16 %v200_v0  ;;  %v400_v0 = vld [vmem:[%s1011_s2] sm:$0xff] }
  0x13   : > { %212 = vst [vmem:[#allocation1 + $0x10] ss:$2 sm:$0xff] %v843_v1 }
  0x14   : > { %204 = vst [vmem:[#allocation1] ss:$2 sm:$0xff] %v845_v2 }
  0x1a   : > { %v849_v3 = vld.sshfl [vmem:[#allocation1 + $0x10] sm:$0xff pattern:$0x75316420] }
  0x1b   : > { %232 = vst [vmem:[#allocation1 + $0x10] ss:$2 sm:$0xff] %v843_v1  ;;  %v852_v4 = vld.sshfl [vmem:[#allocation1] sm:$0xff pattern:$0x75316420]  ;;  %v218_v53 = vrot.slane %v849_v3, 5 }
  0x1c   : > { %v854_v5 = vld.sshfl [vmem:[#allocation1 + $0x8] sm:$0xff pattern:$0x75316420] }
  0x1d   : > { %210 = vst [vmem:[#allocation1] ss:$2 sm:$0xff] %v845_v2 }
  0x22   : > { %v235_v6 = vld.sshfl [vmem:[#allocation1 + $0x10] sm:$0xff pattern:$0x75316420] }
  0x23   : > { %v238_v7 = vrot.slane %v235_v6, 2  ;;  %252 = vst [vmem:[#allocation1 + $0x10] ss:$2 sm:$0xff] %v843_v1 }
  0x24   : > { %v213_v8 = vld.sshfl [vmem:[#allocation1] sm:$0xff pattern:$0x75316420]  ;;  %v214_v9 = vld.sshfl [vmem:[#allocation1 + $0x8] sm:$0xff pattern:$0x75316420] }
  0x25   : > { %243 = vrot.lane.b32.xlu0 %v238_v7, %s789_s20  ;;  %v216_v10 = vrot.slane %v213_v8, 5  ;;  %v217_v11 = vrot.slane %v214_v9, 5  ;;  %230 = vst [vmem:[#allocation1] ss:$2 sm:$0xff] %v845_v2 }
  0x27   : > { %v722_v12 = vpack.i.bf16 %v217_v11, %v216_v10 }
  0x2a   : > { %v255_v13 = vld.sshfl [vmem:[#allocation1 + $0x10] sm:$0xff pattern:$0x75316420] }
  0x2b   : > { %273 = vst [vmem:[#allocation1 + $0x11] ss:$2 sm:$0xff] %v843_v1  ;;  %v258_v24 = vrot.slane %v255_v13, 7 }
  0x2c   : > { %v233_v14 = vld.sshfl [vmem:[#allocation1] sm:$0xff pattern:$0x75316420]  ;;  %v234_v15 = vld.sshfl [vmem:[#allocation1 + $0x8] sm:$0xff pattern:$0x75316420] }
  0x2d   : > { %250 = vst [vmem:[#allocation1] ss:$2 sm:$0xff] %v845_v2  ;;  %723 = vrot.lane.b32.xlu0 %v722_v12, %s790_s21  ;;  %v236_v16 = vrot.slane %v233_v14, 2  ;;  %v237_v17 = vrot.slane %v234_v15, 2 }
  0x2f   : > { %v727_v18 = vpack.i.bf16 %v237_v17, %v236_v16 }
  0x31   : > { %728 = vrot.lane.b32.xlu2 %v727_v18, %s789_s20 }
  0x32   : > { %v276_v19 = vld.sshfl [vmem:[#allocation1 + $0x10] sm:$0xff pattern:$0x75316420] }
  0x33   : > { %290 = vst [vmem:[#allocation1 + $0x10] ss:$2 sm:$0xff] %v843_v1 }
  0x34   : > { %v253_v20 = vld.sshfl [vmem:[#allocation1] sm:$0xff pattern:$0x75316420]  ;;  %v254_v21 = vld.sshfl [vmem:[#allocation1 + $0x8] sm:$0xff pattern:$0x75316420] }
  0x35   : > { %v256_v22 = vrot.slane %v253_v20, 7  ;;  %v257_v23 = vrot.slane %v254_v21, 7  ;;  %271 = vst [vmem:[#allocation1 + $0x1] ss:$2 sm:$0xff] %v845_v2 }
  0x37   : > { %v732_v25 = vpack.i.bf16 %v257_v23, %v256_v22 }
  0x39   : > { %733 = vrot.lane.b32.xlu1 %v732_v25, %s791_s22  ;;  %263 = vrot.lane.b32.xlu2 %v258_v24, %s791_s22  ;;  %v403_v25 = vld [vmem:[%s1011_s2 + $0x18] sm:$0xff] }
  0x3a   : > { %v293_v26 = vld.sshfl [vmem:[#allocation1 + $0x10] sm:$0xff pattern:$0x75316420] }
  0x3b   : > { %v296_v27 = vrot.slane %v293_v26, 1  ;;  %310 = vst [vmem:[#allocation1 + $0x10] ss:$2 sm:$0xff] %v843_v1 }
  0x3c   : > { %v274_v28 = vld.sshfl [vmem:[#allocation1] sm:$0xff pattern:$0x75316420]  ;;  %v275_v29 = vld.sshfl [vmem:[#allocation1 + $0x8] sm:$0xff pattern:$0x75316420] }
  0x3d   : > { %288 = vst [vmem:[#allocation1] ss:$2 sm:$0xff] %v845_v2  ;;  %301 = vrot.lane.b32.xlu0 %v296_v27, %s792_s23  ;;  %v752_v54 = vpack.i.bf16 %v275_v29, %v274_v28 }
  0x42   : > { %v313_v30 = vld.sshfl [vmem:[#allocation1 + $0x10] sm:$0xff pattern:$0x75316420] }
  0x43   : > { %v316_v31 = vrot.slane %v313_v30, 6  ;;  %330 = vst [vmem:[#allocation1 + $0x10] ss:$2 sm:$0xff] %v843_v1 }
  0x44   : > { %v291_v32 = vld.sshfl [vmem:[#allocation1] sm:$0xff pattern:$0x75316420]  ;;  %v292_v33 = vld.sshfl [vmem:[#allocation1 + $0x8] sm:$0xff pattern:$0x75316420] }
  0x45   : > { %321 = vrot.lane.b32.xlu1 %v316_v31, %s793_s24  ;;  %v294_v34 = vrot.slane %v291_v32, 1  ;;  %v295_v35 = vrot.slane %v292_v33, 1  ;;  %308 = vst [vmem:[#allocation1] ss:$2 sm:$0xff] %v845_v2 }
  0x47   : > { %v737_v36 = vpack.i.bf16 %v295_v35, %v294_v34 }
  0x49   : > { %738 = vrot.lane.b32.xlu0 %v737_v36, %s792_s23 }
  0x4a   : > { %v333_v37 = vld.sshfl [vmem:[#allocation1 + $0x10] sm:$0xff pattern:$0x75316420] }
  0x4b   : > { %v336_v38 = vrot.slane %v333_v37, 3  ;;  %350 = vst [vmem:[#allocation1 + $0x10] ss:$2 sm:$0xff] %v843_v1 }
  0x4c   : > { %v311_v39 = vld.sshfl [vmem:[#allocation1] sm:$0xff pattern:$0x75316420]  ;;  %v312_v40 = vld.sshfl [vmem:[#allocation1 + $0x8] sm:$0xff pattern:$0x75316420] }
  0x4d   : > { %v314_v41 = vrot.slane %v311_v39, 6  ;;  %v315_v42 = vrot.slane %v312_v40, 6  ;;  %328 = vst [vmem:[#allocation1] ss:$2 sm:$0xff] %v845_v2  ;;  %341 = vrot.lane.b32.xlu2 %v336_v38, %s794_s25  ;;  %v402_v39 = vld [vmem:[%s1011_s2 + $0x10] sm:$0xff]  ;;  %v401_v40 = vld [vmem:[%s1011_s2 + $0x8] sm:$0xff] }
  0x4f   : > { %v742_v43 = vpack.i.bf16 %v315_v42, %v314_v41 }
  0x51   : > { %743 = vrot.lane.b32.xlu1 %v742_v43, %s793_s24 }
  0x52   : > { %v353_v48 = vld.sshfl [vmem:[#allocation1 + $0x10] sm:$0xff pattern:$0x75316420] }
  0x54   : > { %v331_v44 = vld.sshfl [vmem:[#allocation1] sm:$0xff pattern:$0x75316420]  ;;  %v332_v45 = vld.sshfl [vmem:[#allocation1 + $0x8] sm:$0xff pattern:$0x75316420] }
  0x55   : > { %v334_v46 = vrot.slane %v331_v44, 3  ;;  %v335_v47 = vrot.slane %v332_v45, 3  ;;  %348 = vst [vmem:[#allocation1] ss:$2 sm:$0xff] %v845_v2  ;;  %v797_v2 = vmov 0  }
  0x56   : > { %762 = vset.pattern.permute.xlu1 %v797_v2  ;;  %764 = vset.pattern.permute.xlu0 %v797_v2 }
  0x57   : > { %v747_v49 = vpack.i.bf16 %v335_v47, %v334_v46  ;;  %763 = vset.pattern.permute.xlu2 %v797_v2 }
  0x59   : > { %358 = vrot.lane.b32.xlu1 %v353_v48, %s795_s26  ;;  %748 = vrot.lane.b32.xlu2 %v747_v49, %s794_s25 }
  0x5c   : > { %v351_v50 = vld.sshfl [vmem:[#allocation1] sm:$0xff pattern:$0x75316420]  ;;  %v352_v51 = vld.sshfl [vmem:[#allocation1 + $0x8] sm:$0xff pattern:$0x75316420] }
  0x5d   : > { %v757_v52 = vpack.i.bf16 %v352_v51, %v351_v50 }
  0x5f   : > { %758 = vrot.lane.b32.xlu0 %v757_v52, %s795_s26  ;;  %v405_v52 = vld [vmem:[%s1011_s2 + $0x28] sm:$0xff] }
  0x61   : > { %223 = vrot.lane.b32.xlu1 %v218_v53, %s790_s21  ;;  %753 = vrot.lane.b32.xlu2 %v752_v54, %s796_s27 }
  0x67   : > { %281 = vrot.lane.b32.xlu0 %v276_v19, %s796_s27 }
  0x69   : > { %410 = vperm.xlu1 %762, %v400_v0   ;;  %415 = vperm.xlu2 %763, %v401_v40  }
  0x6f   : > { %420 = vperm.xlu0 %764, %v402_v39  }
  0x71   : > { %425 = vperm.xlu1 %762, %v403_v25  }
  0x79   : > { %435 = vperm.xlu1 %762, %v405_v52  }
  0x8b   : > { %v873_v55 = vpop.permute.xlu2 %728 }
  0x8c   : > { %v730_v3 = vunpack.i.l.bf16 %v873_v55  ;;  %v731_v6 = vunpack.i.h.bf16 %v873_v55  ;;  %v407_v55 = vld [vmem:[%s1011_s2 + $0x38] sm:$0xff] }
  0x8d   : > { %445 = vperm.xlu0 %764, %v407_v55  }
  0x8e   : > { %v893_v11 = vsel %vm245_vm0, %v730_v3, %v731_v6  ;;  %v406_v3 = vld [vmem:[%s1011_s2 + $0x30] sm:$0xff] }
  0x93   : > { %v875_v56 = vpop.permute.xlu2 %263 }
  0x97   : > { %v877_v57 = vpop.permute.xlu0 %243 }
  0x98   : > { %v247_v53 = vsel %vm245_vm0, %v731_v6, %v877_v57  ;;  %vm468_vm0 = vcmask 261120   ;;  %v680_v6 = vld [vmem:[%s1010_s1 + $0x8] sm:$0xff] }
  0x9f   : > { %v881_v60 = vpop.permute.xlu0 %723 }
  0xa0   : > { %v726_v12 = vunpack.i.h.bf16 %v881_v60  ;;  %v725_v19 = vunpack.i.l.bf16 %v881_v60 }
  0xa2   : > { %v226_v37 = vsel %vm225_vm2, %v725_v19, %v726_v12 }
  0xa3   : > { %v366_v49 = vsel %vm365_vm5, %v852_v4, %v226_v37 }
  0xa7   : > { %v342_v59 = vpop.permute.xlu2 %341 }
  0xab   : > { %v879_v58 = vpop.permute.xlu1 %733 }
  0xac   : > { %v735_v13 = vunpack.i.l.bf16 %v879_v58  ;;  %v736_v20 = vunpack.i.h.bf16 %v879_v58 }
  0xae   : > { %v266_v26 = vsel %vm265_vm1, %v735_v13, %v736_v20  ;;  %v267_v54 = vsel %vm265_vm1, %v736_v20, %v875_v56  ;;  %v404_v56 = vld [vmem:[%s1011_s2 + $0x20] sm:$0xff] }
  0xaf   : > { %v302_v63 = vpop.permute.xlu0 %301  ;;  %v372_v38 = vsel %vm371_vm3, %v893_v11, %v266_v26  ;;  %v373_v57 = vsel %vm371_vm3, %v247_v53, %v267_v54  ;;  %430 = vperm.xlu2 %763, %v404_v56  }
  0xb3   : > { %v749_v62 = vpop.permute.xlu2 %748 }
  0xb4   : > { %v751_v21 = vunpack.i.h.bf16 %v749_v62  ;;  %v750_v22 = vunpack.i.l.bf16 %v749_v62  ;;  %v681_v62 = vld [vmem:[%s1010_s1 + $0x10] sm:$0xff] }
  0xb6   : > { %v344_v31 = vsel %vm343_vm8, %v750_v22, %v751_v21  ;;  %v345_v33 = vsel %vm343_vm8, %v751_v21, %v342_v59 }
  0xb7   : > { %v322_v61 = vpop.permute.xlu1 %321  ;;  %440 = vperm.xlu2 %763, %v406_v3  }
  0xbb   : > { %v888_v7 = vpop.permute.xlu2 %753  ;;  %v739_v8 = vpop.permute.xlu0 %738 }
  0xbc   : > { %v756_v15 = vunpack.i.h.bf16 %v888_v7  ;;  %v755_v16 = vunpack.i.l.bf16 %v888_v7  ;;  %v741_v17 = vunpack.i.h.bf16 %v739_v8  ;;  %v740_v18 = vunpack.i.l.bf16 %v739_v8  ;;  %v682_v7 = vld [vmem:[%s1010_s1 + $0x18] sm:$0xff] }
  0xbe   : > { %v305_v27 = vsel %vm303_vm4, %v741_v17, %v302_v63  ;;  %v304_v28 = vsel %vm303_vm4, %v740_v18, %v741_v17  ;;  %v284_v29 = vsel %vm283_vm7, %v755_v16, %v756_v15  ;;  %vm368_vm4 = vcmask 1045504  }
  0xbf   : > { %v375_v42 = vsel %vm374_vm12, %v372_v38, %v284_v29  ;;  %v369_v4 = vsel %vm368_vm4, %v366_v49, %v893_v11 }
  0xc0   : > { %v378_v51 = vsel %vm377_vm13, %v375_v42, %v304_v28 }
  0xc1   : > { %v388_v60 = vpack.c.bf16 %v378_v51, %v369_v4 }
  0xc3   : > { %v744_v1 = vpop.permute.xlu1 %743 }
  0xc4   : > { %v746_v9 = vunpack.i.h.bf16 %v744_v1  ;;  %v745_v10 = vunpack.i.l.bf16 %v744_v1 }
  0xc6   : > { %v325_v23 = vsel %vm323_vm6, %v746_v9, %v322_v61  ;;  %v324_v24 = vsel %vm323_vm6, %v745_v10, %v746_v9  ;;  %v416_v9 = vpop.permute.xlu2 %415 }
  0xc7   : > { %v381_v32 = vsel %vm380_vm9, %v304_v28, %v324_v24  ;;  %v382_v34 = vsel %vm380_vm9, %v305_v27, %v325_v23 }
  0xc8   : > { %v384_v44 = vsel %vm383_vm11, %v381_v32, %v344_v31  ;;  %v385_v46 = vsel %vm383_vm11, %v382_v34, %v345_v33 }
  0xcb   : > { %v359_v14 = vpop.permute.xlu1 %358 }
  0xd1   : > { %v759_v30 = vpop.permute.xlu0 %758 }
  0xd2   : > { %v761_v35 = vunpack.i.h.bf16 %v759_v30  ;;  %v760_v36 = vunpack.i.l.bf16 %v759_v30 }
  0xd3   : > { %v224_v41 = vpop.permute.xlu1 %223 }
  0xd4   : > { %v361_v43 = vsel %vm360_vm10, %v760_v36, %v761_v35  ;;  %v362_v45 = vsel %vm360_vm10, %v761_v35, %v359_v14  ;;  %v227_v50 = vsel %vm225_vm2, %v726_v12, %v224_v41 }
  0xd5   : > { %v663_v47 = vpack.c.bf16 %v361_v43, %v384_v44  ;;  %v670_v48 = vpack.c.bf16 %v362_v45, %v385_v46  ;;  %v367_v58 = vsel %vm365_vm5, %v854_v5, %v227_v50  ;;  %v679_v5 = vld [vmem:[%s1010_s1] sm:$0xff] }
  0xd6   : > { %v370_v0 = vsel %vm368_vm4, %v367_v58, %v247_v53 }
  0xd7   : > { %664 = vmatpush.bf16.msk.msra.mxu0 %vm662_vm15, %v663_v47  ;;  %683 = vmatpush.bf16.msk.msra.mxu2 %vm662_vm15, %v663_v47 }
  0xd8   : > { %671 = vmatpush.bf16.msk.msra.mxu1 %vm662_vm15, %v670_v48  ;;  %685 = vmatpush.bf16.msk.msra.mxu3 %vm662_vm15, %v670_v48 }
  0xd9   : > { %v282_v59 = vpop.permute.xlu0 %281 }
  0xda   : > { %v285_v61 = vsel %vm283_vm7, %v756_v15, %v282_v59 }
  0xdb   : > { %v376_v63 = vsel %vm374_vm12, %v373_v57, %v285_v61  ;;  %488 = vmatpush.bf16.msra.mxu0 %v388_v60  ;;  %684 = vmatpush.bf16.msra.mxu2 %v388_v60  ;;  %v411_v8 = vpop.permute.xlu1 %410 }
  0xdc   : > { %v379_v1 = vsel %vm377_vm13, %v376_v63, %v305_v27 }
  0xdd   : > { %v389_v2 = vpack.c.bf16 %v379_v1, %v370_v0 }
  0xde   : > { %665 = vmatmul.msk.bf16.vlgmr.msra.gmra.mxu0 %vm468_vm0, %v679_v5  ;;  %667 = vmatmul.msk.bf16.vlgmr.msra.gmra.mxu2 %vm468_vm0, %v681_v62 }
  0xdf   : > { %517 = vmatpush.bf16.msra.mxu1 %v389_v2  ;;  %686 = vmatpush.bf16.msra.mxu3 %v389_v2 }
  0xe1   : > { %v421_v28 = vpop.permute.xlu0 %420 }
  0xe2   : > { %672 = vmatmul.msk.bf16.vlgmr.msra.gmra.mxu1 %vm468_vm0, %v679_v5  ;;  %674 = vmatmul.msk.bf16.vlgmr.msra.gmra.mxu3 %vm468_vm0, %v681_v62 }
  0xe3   : > { %v426_v12 = vpop.permute.xlu1 %425 }
  0xeb   : > { %v436_v23 = vpop.permute.xlu1 %435 }
  0xee   : > { %666 = vmatmul.msk.bf16.gmra.mxu0 %vm468_vm0, %v680_v6  ;;  %668 = vmatmul.msk.bf16.gmra.mxu2 %vm468_vm0, %v682_v7 }
  0xf2   : > { %673 = vmatmul.msk.bf16.gmra.mxu1 %vm468_vm0, %v680_v6  ;;  %675 = vmatmul.msk.bf16.gmra.mxu3 %vm468_vm0, %v682_v7 }
  0xff   : > { %v446_v43 = vpop.permute.xlu0 %445 }
 0x109   : > { %v431_v14 = vpop.permute.xlu2 %430 }
 0x111   : > { %v441_v34 = vpop.permute.xlu2 %440 }
 0x15b   : > { %v490_v10 = vpop.f32.mrf.mxu0 }
 0x15c   : > { %v491_v11 = vadd.f32 %v490_v10, %v411_v8 }
 0x15e   : > { %539 = vst [vmem:[%s982_s5] sm:$0xff] %v491_v11 }
 0x15f   : > { %v519_v13 = vpop.f32.mrf.mxu1 }
 0x160   : > { %v520_v15 = vadd.f32 %v519_v13, %v411_v8 }
 0x161   : > { %v500_v16 = vpop.f32.mrf.mxu2 }
 0x162   : > { %540 = vst [vmem:[%s982_s5 + $0x8] sm:$0xff] %v520_v15  ;;  %v501_v17 = vadd.f32 %v500_v16, %v431_v14 }
 0x163   : > { %v492_v18 = vpop.f32.mrf.mxu0 }
 0x164   : > { %v493_v19 = vadd.f32 %v492_v18, %v416_v9  ;;  %547 = vst [vmem:[%s982_s5 + $0x40] sm:$0xff] %v501_v17 }
 0x165   : > { %v529_v20 = vpop.f32.mrf.mxu3 }
 0x166   : > { %541 = vst [vmem:[%s982_s5 + $0x10] sm:$0xff] %v493_v19  ;;  %v530_v21 = vadd.f32 %v529_v20, %v431_v14 }
 0x167   : > { %v521_v22 = vpop.f32.mrf.mxu1 }
 0x168   : > { %548 = vst [vmem:[%s982_s5 + $0x48] sm:$0xff] %v530_v21  ;;  %v522_v24 = vadd.f32 %v521_v22, %v416_v9 }
 0x169   : > { %v502_v25 = vpop.f32.mrf.mxu2 }
 0x16a   : > { %542 = vst [vmem:[%s982_s5 + $0x18] sm:$0xff] %v522_v24  ;;  %v503_v26 = vadd.f32 %v502_v25, %v436_v23 }
 0x16b   : > { %v495_v27 = vpop.f32.mrf.mxu0 }
 0x16c   : > { %549 = vst [vmem:[%s982_s5 + $0x50] sm:$0xff] %v503_v26  ;;  %v496_v29 = vadd.f32 %v495_v27, %v421_v28 }
 0x16d   : > { %v531_v30 = vpop.f32.mrf.mxu3 }
 0x16e   : > { %543 = vst [vmem:[%s982_s5 + $0x20] sm:$0xff] %v496_v29  ;;  %v532_v31 = vadd.f32 %v531_v30, %v436_v23 }
 0x16f   : > { %v524_v32 = vpop.f32.mrf.mxu1 }
 0x170   : > { %550 = vst [vmem:[%s982_s5 + $0x58] sm:$0xff] %v532_v31  ;;  %v525_v33 = vadd.f32 %v524_v32, %v421_v28 }
 0x171   : > { %v505_v35 = vpop.f32.mrf.mxu2 }
 0x172   : > { %544 = vst [vmem:[%s982_s5 + $0x28] sm:$0xff] %v525_v33  ;;  %v506_v36 = vadd.f32 %v505_v35, %v441_v34 }
 0x173   : > { %v497_v37 = vpop.f32.mrf.mxu0 }
 0x174   : > { %551 = vst [vmem:[%s982_s5 + $0x60] sm:$0xff] %v506_v36  ;;  %v498_v38 = vadd.f32 %v497_v37, %v426_v12 }
 0x175   : > { %v534_v39 = vpop.f32.mrf.mxu3 }
 0x176   : > { %545 = vst [vmem:[%s982_s5 + $0x30] sm:$0xff] %v498_v38  ;;  %v535_v40 = vadd.f32 %v534_v39, %v441_v34 }
 0x177   : > { %v526_v41 = vpop.f32.mrf.mxu1 }
 0x178   : > { %552 = vst [vmem:[%s982_s5 + $0x68] sm:$0xff] %v535_v40  ;;  %v527_v42 = vadd.f32 %v526_v41, %v426_v12 }
 0x179   : > { %v507_v44 = vpop.f32.mrf.mxu2 }
 0x17a   : > { %546 = vst [vmem:[%s982_s5 + $0x38] sm:$0xff] %v527_v42  ;;  %v508_v45 = vadd.f32 %v507_v44, %v446_v43 }
 0x17c   : > { %553 = vst [vmem:[%s982_s5 + $0x70] sm:$0xff] %v508_v45 }
 0x17d   : > { %v536_v46 = vpop.f32.mrf.mxu3 }
 0x17e   : > { %v537_v47 = vadd.f32 %v536_v46, %v446_v43 }
 0x180   : > { %554 = vst [vmem:[%s982_s5 + $0x78] sm:$0xff] %v537_v47 }
 0x181 PF: > { %s13_s14 = sadd.s32 1, %s787_s14   ;;  %s1013_s12 = smov %s783_s13 }
 0x182   : > { %p10_p5 = scmp.ge.s32.totalorder %s13_s14, 4   ;;  %s1014_s13 = smov %s1016_s15 }
 0x184   :  { %12 = sbr.rel (!%p10_p5) target bundleno = 2 (0x2), region = 72 }

</bundles_post_ra>
